<compile_context>
chip_gen: v7x
topology: tpu7x:2x2x1
jax: 0.10.0
libtpu: 0.0.40
codegen_flags: <defaults>
</compile_context>

<pallas_src>
import math

import jax
import jax.numpy as jnp
from jax import lax
from jax.experimental import pallas as pl
from jax.experimental.pallas import tpu as pltpu


# --------------------------------------------------------------------------
# pltpu.roll direction probe (tiny kernel, run once at setup).
# Returns s such that  pltpu.roll(x, shift=(s*d) % M, axis=-1)[..., p]
#                      == x[..., (p + d) % M].
# --------------------------------------------------------------------------
def _detect_roll_sign():
    def k(x_ref, o_ref):
        o_ref[...] = pltpu.roll(x_ref[...], shift=1, axis=1)

    x = jnp.tile(jnp.arange(128, dtype=jnp.float32)[None, :], (8, 1))
    y = pl.pallas_call(
        k, out_shape=jax.ShapeDtypeStruct((8, 128), jnp.float32))(x)
    # jnp.roll-like semantics: out[0] == x[-1] == 127  ->  shift = -d
    return -1 if abs(float(y[0, 0]) - 127.0) < 0.5 else +1


# --------------------------------------------------------------------------
# Host-side operand builders (pure layout / constant plumbing, run once)
# --------------------------------------------------------------------------
def _interp_matrix(n_in, n_out):
    # bilinear, align_corners=True sampling matrix (n_out, n_in)
    pos = jnp.arange(n_out, dtype=jnp.float32) * (n_in - 1) / (n_out - 1)
    idx = jnp.arange(n_in, dtype=jnp.float32)
    return jnp.maximum(0.0, 1.0 - jnp.abs(pos[:, None] - idx[None, :]))


def _upsample_op(h, w):
    """(h*w, 4*h*w) per-image operator: x_flat @ U == 2x bilinear upsample."""
    ah = _interp_matrix(h, 2 * h)                      # (2h, h)
    aw = _interp_matrix(w, 2 * w)                      # (2w, w)
    u = jnp.einsum("ph,qw->pqhw", ah, aw).reshape(4 * h * w, h * w)
    return jnp.transpose(u)                            # (h*w, 4*h*w)


def _taps(w_hwio):
    """HWIO (3,3,cin,cout) -> tap-major (9, cout, cin), tap t = kh*3 + kw."""
    cout, cin = w_hwio.shape[3], w_hwio.shape[2]
    return jnp.transpose(w_hwio, (0, 1, 3, 2)).reshape(9, cout, cin)


def _flatten_taps(w9):
    """(9, cout, cin) -> (cout, 9*cin); column t*cin+i matches the tap stack."""
    t, cout, cin = w9.shape
    return jnp.transpose(w9, (1, 0, 2)).reshape(cout, t * cin)


# --------------------------------------------------------------------------
# Fused-forward factory
# --------------------------------------------------------------------------
def make_aggregation_forward(params, channel, batch, h1, roll_sign,
                             matmul_dtype=jnp.bfloat16):
    C, N = channel, batch
    H16, H32 = 2 * h1, 4 * h1
    M8, M16, M32 = h1 * h1, H16 * H16, H32 * H32

    # static (raw offset, lane-roll argument) per 3x3 tap, per resolution
    def tap_shifts(width, m):
        out = []
        for kh in range(3):
            for kw in range(3):
                d = (kh - 1) * width + (kw - 1)
                out.append((d, (roll_sign * d) % m))
        return tuple(out)

    sh16 = tap_shifts(H16, M16)
    sh32 = tap_shifts(H32, M32)

    # ---- conv weights: BN scale folded in, taps flattened to (Cout, 9*Cin) ----
    def prep(name):
        p = params[name]
        w9 = _taps(p["w"]) * p["scale"].reshape(1, -1, 1)   # fold BN scale
        return w9, jnp.transpose(p["shift"])                # shift as (cout, 1)

    w_u1, b_u1 = prep("conv_upsample1")
    w_u4, b_u4 = prep("conv_upsample4")
    # conv_upsample1 & conv_upsample4 consume the same input -> widen Cout
    w14 = _flatten_taps(jnp.concatenate([w_u1, w_u4], axis=1)).astype(matmul_dtype)
    b14 = jnp.concatenate([b_u1, b_u4], axis=0)

    w_u2, b_u2 = prep("conv_upsample2")
    w_u3, b_u3 = prep("conv_upsample3")
    # conv_upsample2/3 fused as one block-diagonal conv on [up(up(x1)); up(x2)]
    z9 = jnp.zeros_like(w_u2)
    w23 = _flatten_taps(jnp.concatenate(
        [jnp.concatenate([w_u2, z9], axis=2),
         jnp.concatenate([z9, w_u3], axis=2)], axis=1)).astype(matmul_dtype)
    b23 = jnp.concatenate([b_u2, b_u3], axis=0)

    w_cc2_9, bcc2 = prep("conv_concat2")
    wcc2 = _flatten_taps(w_cc2_9).astype(matmul_dtype)
    w_u5_9, bu5 = prep("conv_upsample5")
    wu5 = _flatten_taps(w_u5_9).astype(matmul_dtype)
    w_cc3_9, bcc3 = prep("conv_concat3")
    wcc3 = _flatten_taps(w_cc3_9).astype(matmul_dtype)

    # conv4 (+BN) and conv5 (1x1, Cout=1, +bias) folded into ONE (1, 9*3C) conv
    w_c4_9, b_c4 = prep("conv4")
    w5 = jnp.transpose(params["conv5_w"])                   # (1, 3C)
    w45 = _flatten_taps(jnp.einsum("oc,tci->toi", w5, w_c4_9)).astype(matmul_dtype)
    b45 = w5 @ b_c4 + params["conv5_b"].reshape(1, 1)       # (1, 1), f32

    # per-image bilinear upsample operators (kept f32: align_corners fractions)
    ut8 = _upsample_op(h1, h1)            # (M8,  M16)
    ut16 = _upsample_op(H16, H16)         # (M16, M32)

    kparams = (ut8, ut16, w14, b14, w23, b23, wcc2, bcc2, wu5, bu5,
               wcc3, bcc3, w45, b45)

    # ---- in-kernel helpers (trace-time; values live in VMEM/vregs) ----
    def border_masks(hh, ww):
        m = hh * ww
        col = lax.broadcasted_iota(jnp.int32, (1, m), 1)
        hc = col // ww
        wc = col - hc * ww
        out = []
        for kh in range(3):
            for kw in range(3):
                dh, dw = kh - 1, kw - 1
                ok = ((hc + dh >= 0) & (hc + dh < hh) &
                      (wc + dw >= 0) & (wc + dw < ww))
                out.append(ok.astype(jnp.float32))
        return out

    def tap_stack(x, masks, shs):
        # (Cin, M) -> (9*Cin, M): lane-rolled + border-masked copy per tap,
        # cast once to the MXU operand dtype.
        pieces = []
        for t, (d, arg) in enumerate(shs):
            if d == 0:                       # center tap: no shift, mask == 1
                pieces.append(x)
            else:
                pieces.append(pltpu.roll(x, shift=arg, axis=1) * masks[t])
        return jnp.concatenate(pieces, axis=0).astype(matmul_dtype)

    def conv3x3(x, w_ref, b_ref, masks, shs):
        s = tap_stack(x, masks, shs)
        return jnp.dot(w_ref[...], s,
                       preferred_element_type=jnp.float32) + b_ref[...]

    # ---- the fused per-image kernel ----
    def kernel(x1_ref, x2_ref, x3_ref, ut8_ref, ut16_ref,
               w14_ref, b14_ref, w23_ref, b23_ref, wcc2_ref, bcc2_ref,
               wu5_ref, bu5_ref, wcc3_ref, bcc3_ref, w45_ref, b45_ref,
               o_ref):
        x1 = x1_ref[0]                       # (C, M8)
        x2 = x2_ref[0]                       # (C, M16)
        x3 = x3_ref[0]                       # (C, M32)
        ut8 = ut8_ref[...]
        ut16 = ut16_ref[...]

        m16 = border_masks(H16, H16)
        m32 = border_masks(H32, H32)

        # bilinear 2x upsample of x1 (align_corners=True) as a matmul
        u_x1 = jnp.dot(x1, ut8, preferred_element_type=jnp.float32)      # (C, M16)

        # conv_upsample1 / conv_upsample4 as one widened conv on u_x1
        c14 = conv3x3(u_x1, w14_ref, b14_ref, m16, sh16)                 # (2C, M16)
        x2_1 = c14[:C] * x2

        # conv_concat2 on the [x2_1 ; conv_upsample4(up(x1))] slab
        y16 = jnp.concatenate([x2_1, c14[C:]], axis=0)                   # (2C, M16)
        x2_2 = conv3x3(y16, wcc2_ref, bcc2_ref, m16, sh16)               # (2C, M16)

        # upsample x2_2 to 32-res and run conv_upsample5
        u22 = jnp.dot(x2_2, ut16, preferred_element_type=jnp.float32)    # (2C, M32)
        c5 = conv3x3(u22, wu5_ref, bu5_ref, m32, sh32)                   # (2C, M32)

        # [up(up(x1)) ; up(x2)] via ONE upsample matmul, then the fused
        # block-diagonal conv_upsample2/3; x3_1 is consumed immediately.
        z32 = jnp.dot(jnp.concatenate([u_x1, x2], axis=0), ut16,
                      preferred_element_type=jnp.float32)                # (2C, M32)
        c23 = conv3x3(z32, w23_ref, b23_ref, m32, sh32)                  # (2C, M32)
        x3_1 = c23[:C] * c23[C:] * x3                                    # (C, M32)

        # conv_concat3 on [x3_1 ; c5]
        y32 = jnp.concatenate([x3_1, c5], axis=0)                        # (3C, M32)
        x3_2 = conv3x3(y32, wcc3_ref, bcc3_ref, m32, sh32)               # (3C, M32)

        # conv4 (+BN) and conv5 folded: straight to the lane-dense output
        o_ref[0] = conv3x3(x3_2, w45_ref, b45_ref, m32, sh32)            # (1, M32)

    # ---- pallas_call plumbing ----
    def img_spec(*shape):
        return pl.BlockSpec((1,) + shape, lambda n: (n, 0, 0))

    grid_spec = pltpu.PrefetchScalarGridSpec(
        num_scalar_prefetch=0,
        grid=(N,),
        in_specs=[img_spec(C, M8), img_spec(C, M16), img_spec(C, M32)]
                + [pl.BlockSpec(p.shape, lambda n: (0, 0)) for p in kparams],
        out_specs=pl.BlockSpec((1, 1, M32), lambda n: (n, 0, 0)),
    )

    fused = pl.pallas_call(
        kernel,
        out_shape=jax.ShapeDtypeStruct((N, 1, M32), jnp.float32),
        grid_spec=grid_spec,
        compiler_params=pltpu.CompilerParams(
            dimension_semantics=("parallel",)),
    )

    def forward(x1, x2, x3):
        # NHWC -> per-image channel-major (N, C, H*W): pure layout plumbing so
        # the kernel sees lane-dense slabs.
        def cm(x):
            nb, hh, ww, cc = x.shape
            return jnp.transpose(x, (0, 3, 1, 2)).reshape(nb, cc, hh * ww)
        out = fused(cm(x1), cm(x2), cm(x3), *kparams)
        return jnp.transpose(out.reshape(N, 1, H32, H32), (0, 2, 3, 1))

    return forward


# --------------------------------------------------------------------------
# Parameters (deterministic, synthetic; eval-mode BatchNorm folded to affine)
# --------------------------------------------------------------------------
def _init_basic_conv(key, cin, cout):
    kw, kg, kb, km, kv = jax.random.split(key, 5)
    w = jax.random.normal(kw, (3, 3, cin, cout), jnp.float32) / math.sqrt(9 * cin)
    gamma = 1.0 + 0.1 * jax.random.normal(kg, (cout,), jnp.float32)
    beta = 0.1 * jax.random.normal(kb, (cout,), jnp.float32)
    rmean = 0.1 * jax.random.normal(km, (cout,), jnp.float32)
    rvar = 1.0 + 0.1 * jax.random.uniform(kv, (cout,), jnp.float32)
    eps = 1e-5
    scale = gamma / jnp.sqrt(rvar + eps)
    shift = beta - rmean * scale
    return {"w": w, "scale": scale.reshape(1, cout), "shift": shift.reshape(1, cout)}


def init_params(key, channel):
    ks = jax.random.split(key, 10)
    p = {
        "conv_upsample1": _init_basic_conv(ks[0], channel, channel),
        "conv_upsample2": _init_basic_conv(ks[1], channel, channel),
        "conv_upsample3": _init_basic_conv(ks[2], channel, channel),
        "conv_upsample4": _init_basic_conv(ks[3], channel, channel),
        "conv_upsample5": _init_basic_conv(ks[4], 2 * channel, 2 * channel),
        "conv_concat2": _init_basic_conv(ks[5], 2 * channel, 2 * channel),
        "conv_concat3": _init_basic_conv(ks[6], 3 * channel, 3 * channel),
        "conv4": _init_basic_conv(ks[7], 3 * channel, 3 * channel),
    }
    kw, kb = jax.random.split(ks[8])
    p["conv5_w"] = jax.random.normal(kw, (3 * channel, 1), jnp.float32) / math.sqrt(3 * channel)
    p["conv5_b"] = 0.1 * jax.random.normal(kb, (1,), jnp.float32)
    return p


# --------------------------------------------------------------------------
# Pure-JAX reference (for the numerical sanity check)
# --------------------------------------------------------------------------
def upsample2x(x):
    n, h, w, c = x.shape
    ah = _interp_matrix(h, 2 * h)
    aw = _interp_matrix(w, 2 * w)
    y = jnp.einsum("ph,nhwc->npwc", ah, x)
    y = jnp.einsum("qw,npwc->npqc", aw, y)
    return y


def _ref_conv_bn(x, p):
    y = lax.conv_general_dilated(x, p["w"], (1, 1), "SAME",
                                 dimension_numbers=("NHWC", "HWIO", "NHWC"))
    return y * p["scale"].reshape(1, 1, 1, -1) + p["shift"].reshape(1, 1, 1, -1)


def _ref_conv1x1(x, w, b):
    y = lax.conv_general_dilated(x, w.reshape(1, 1, *w.shape), (1, 1), "SAME",
                                 dimension_numbers=("NHWC", "HWIO", "NHWC"))
    return y + b.reshape(1, 1, 1, -1)


def reference_forward(params, x1, x2, x3):
    up = upsample2x
    u_x1 = up(x1)
    x2_1 = _ref_conv_bn(u_x1, params["conv_upsample1"]) * x2
    x3_1 = (_ref_conv_bn(up(u_x1), params["conv_upsample2"])
            * _ref_conv_bn(up(x2), params["conv_upsample3"]) * x3)
    x2_2 = jnp.concatenate(
        [x2_1, _ref_conv_bn(u_x1, params["conv_upsample4"])], axis=-1)
    x2_2 = _ref_conv_bn(x2_2, params["conv_concat2"])
    x3_2 = jnp.concatenate(
        [x3_1, _ref_conv_bn(up(x2_2), params["conv_upsample5"])], axis=-1)
    x3_2 = _ref_conv_bn(x3_2, params["conv_concat3"])
    x = _ref_conv_bn(x3_2, params["conv4"])
    return _ref_conv1x1(x, params["conv5_w"], params["conv5_b"])


# --------------------------------------------------------------------------
if __name__ == "__main__":
    key = jax.random.PRNGKey(0)
    k1, k2, k3, kp = jax.random.split(key, 4)

    N, C, H = 2, 4, 8
    # NHWC inputs (PyTorch NCHW equivalents: (2,4,8,8), (2,4,16,16), (2,4,32,32))
    x1 = jax.random.normal(k1, (N, H, H, C), jnp.float32)
    x2 = jax.random.normal(k2, (N, 2 * H, 2 * H, C), jnp.float32)
    x3 = jax.random.normal(k3, (N, 4 * H, 4 * H, C), jnp.float32)

    params = init_params(kp, C)

    roll_sign = _detect_roll_sign()

    fwd = jax.jit(make_aggregation_forward(params, C, N, H, roll_sign,
                                           matmul_dtype=jnp.bfloat16))
    fwd_f32 = jax.jit(make_aggregation_forward(params, C, N, H, roll_sign,
                                               matmul_dtype=jnp.float32))

    out = jax.block_until_ready(fwd(x1, x2, x3))
    out_f32 = jax.block_until_ready(fwd_f32(x1, x2, x3))
    ref = jax.block_until_ready(reference_forward(params, x1, x2, x3))

    assert out.shape == (N, 4 * H, 4 * H, 1), out.shape
    assert bool(jnp.all(jnp.isfinite(out)))

    # exact-math check: the f32-MXU variant of the same kernel must match the
    # XLA reference tightly (validates the tap-stack / fusion / fold logic).
    err_f32 = float(jnp.max(jnp.abs(out_f32 - ref)))
    assert bool(jnp.allclose(out_f32, ref, rtol=5e-3, atol=5e-3)), err_f32

    # bf16-MXU variant: error budget = bf16 operand rounding through the
    # 6-matmul conv cascade (upsample operators and accumulation stay f32);
    # bound it at 5% of the output dynamic range.
    out_scale = float(jnp.maximum(1.0, jnp.max(jnp.abs(ref))))
    err_bf16 = float(jnp.max(jnp.abs(out - ref)))
    assert err_bf16 <= 5e-2 * out_scale, (err_bf16, out_scale)

    print("KERNEL_OK")
</pallas_src>

<mosaic_0001>
module attributes {stable_mosaic.version = 11 : i64} {
  func.func @k(%arg0: memref<8x128xf32, #tpu.memory_space<vmem>>, %arg1: memref<8x128xf32, #tpu.memory_space<vmem>>) attributes {dimension_semantics = [], scalar_prefetch = 0 : i64, scratch_operands = 0 : i64, tpu.core_type = #tpu.core_type<tc>} {
    %c0 = arith.constant 0 : index
    %c0_0 = arith.constant 0 : index
    %0 = vector.load %arg0[%c0, %c0_0] : memref<8x128xf32, #tpu.memory_space<vmem>>, vector<8x128xf32>
    %c1_i32 = arith.constant 1 : i32
    %1 = tpu.dynamic_rotate %0 by %c1_i32 dim 1 : vector<8x128xf32>, i32 -> vector<8x128xf32>
    %c0_1 = arith.constant 0 : index
    %c0_2 = arith.constant 0 : index
    %2 = vector.load %arg1[%c0_1, %c0_2] : memref<8x128xf32, #tpu.memory_space<vmem>>, vector<8x128xf32>
    tpu.vector_store %arg1[%c0_1, %c0_2], %1 {strides = array<i32>} : memref<8x128xf32, #tpu.memory_space<vmem>>, vector<8x128xf32>,
    return
  }
}

</mosaic_0001>

<bundles_post_ra>
// kernel: tpu_custom_call.1
= control target key start
LH: loop header
LB: loop body
LE: loop exit
PB: predicated region body
PF: predicated region fallthrough
CT: control target
= control target key end

     0   :  { %6 = vsyncpa [#allocation3], 0  ;;  %s128_s0 = inlined_call_operand.hbm [shape: f32[8,128], index: 0, kind: input, shape index: {}]   ;;  %s129_s1 = inlined_call_operand.hbm [shape: f32[8,128], index: 1, kind: output, shape index: {}]  }
   0x1   :  { %7 = vsyncpa [#allocation4], 0  ;;  %s91_s6 = smov [#allocation2]   ;;  %s43_s10 = scalar_lea.hbm %s128_s0, 128 }
   0x2   :  { %s14_s7 = sshll.u32 %s91_s6, 4  ;;  %p44_p0 = scmp.ne.s32.totalorder %s128_s0, %s43_s10  ;;  %s15_s7 = int_to_ptr.vmem [resolvable:$true] %s14_s7 }
   0x3   :  { %p47_p1 = scmp.lt.u32.totalorder %s43_s10, %s128_s0 }
   0x5   :  { %p49_p2 = pnand %p47_p1, %p44_p0 }
   0x7   :  { %52 = shalt.err (!%p49_p2)
}
   0x8   :  { %s53_s15 = scalar_lea.vmem %s15_s7, 128  ;;  %p58_p4 = scmp.lt.s32.totalorder %s15_s7, %s15_s7 }
   0x9   :  { %p54_p3 = scmp.ne.s32.totalorder %s15_s7, %s53_s15  ;;  %p59_p5 = scmp.lt.s32.totalorder %s53_s15, %s53_s15 }
   0xb   :  { %p60_p6 = por %p59_p5, %p58_p4 }
   0xd   :  { %p61_p7 = pnand %p60_p6, %p54_p3 }
   0xf   :  { %64 = shalt.err (!%p61_p7)
}
  0x10   :  { %17 = dma.hbm_to_vmem [thread:$0]  %s128_s0, 128, %s15_s7, [#allocation3]  }
  0x11   :  { %87 = dma.done.wait [#allocation3], 128  }
  0x12   :  { %88 = vsyncadd [#allocation3], 4294967168  ;;  %v21_v0 = vld [vmem:[#allocation2] sm:$0xff]  ;;  %s92_s18 = smov 1   ;;  %s93_s19 = smov [#allocation5]  }
  0x13   :  { %22 = vrot.lane.b32.xlu0 %v21_v0, %s92_s18  ;;  %s31_s20 = sshll.u32 %s93_s19, 4  ;;  %s32_s20 = int_to_ptr.vmem [resolvable:$true] %s31_s20 }
  0x14   :  { %s65_s21 = scalar_lea.vmem %s32_s20, 128  ;;  %p70_p9 = scmp.lt.s32.totalorder %s32_s20, %s32_s20 }
  0x15   :  { %p66_p8 = scmp.ne.s32.totalorder %s32_s20, %s65_s21  ;;  %p71_p10 = scmp.lt.s32.totalorder %s65_s21, %s65_s21 }
  0x17   :  { %p72_p11 = por %p71_p10, %p70_p9 }
  0x19   :  { %p73_p12 = pnand %p72_p11, %p66_p8 }
  0x85   :  { %v23_v1 = vpop.permute.xlu0 %22 }
  0x86   :  { %24 = vst [vmem:[#allocation5] sm:$0xff] %v23_v1 }
  0x87   :  { %76 = shalt.err (!%p73_p12)
}
  0x88   :  { %s77_s0 = scalar_lea.hbm %s129_s1, 128 }
  0x89   :  { %p78_p13 = scmp.ne.s32.totalorder %s129_s1, %s77_s0  ;;  %p81_p0 = scmp.lt.u32.totalorder %s77_s0, %s129_s1 }
  0x8b   :  { %p83_p1 = pnand %p81_p0, %p78_p13 }
  0x8d   :  { %86 = shalt.err (!%p83_p1)
}
  0x8e   :  { %34 = dma.vmem_to_hbm [thread:$0]  %s32_s20, 128, %s129_s1, [#allocation4]  }
  0x8f   :  { %89 = dma.done.wait [#allocation4], 128  }
  0x90   :  { %90 = vsyncadd [#allocation4], 4294967168 }
  0x91   :  { %38 = vsyncpa [#allocation3], 1 }
  0x92   :  { %39 = vsyncpa [#allocation4], 1 }

</bundles_post_ra>
